<compile_context>
chip_gen: v6e
topology: v6e:2x2x1
jax: 0.10.0
libtpu: 0.0.40
codegen_flags: <defaults>
</compile_context>

<pallas_src>
import functools

import numpy as np

import jax
import jax.numpy as jnp
from jax import lax
from jax.experimental import pallas as pl
from jax.experimental.pallas import tpu as pltpu


def _round_up(x, m):
    return ((x + m - 1) // m) * m


@functools.lru_cache(maxsize=1)
def _vmem_capacity_bytes():
    """Physical VMEM per TensorCore; falls back to the smallest current chip (64 MiB, v7x)."""
    try:
        return int(pltpu.get_tpu_info().vmem_capacity_bytes)
    except Exception:
        return 64 * 1024 * 1024


def _sublane_multiple(dtype):
    # Sub-32-bit dtypes pack along sublanes: f32 -> 8, bf16 -> 16, int8/fp8 -> 32.
    return max(8, 32 // np.dtype(dtype).itemsize)


def _pick_tiles(M, N, K, x_dtype, w_dtype, out_dtype, sub_m, vmem_capacity):
    """Pick (tm, tn, tk) so the double-buffered footprint fits ~3/8 of physical VMEM."""
    isx = np.dtype(x_dtype).itemsize
    isw = np.dtype(w_dtype).itemsize
    iso = np.dtype(out_dtype).itemsize
    use_acc = np.dtype(out_dtype) != np.dtype(jnp.float32)

    # 128 MiB chips (v5e/v6e) -> ~48 MiB operand budget; 64 MiB chips (v7x) -> ~24 MiB.
    budget = (vmem_capacity * 3) // 8

    max_tm = _round_up(M, sub_m)
    max_tn = _round_up(N, 128)
    max_tk = _round_up(K, 128)

    def footprint(tm, tn, tk):
        buffered = 2 * (tm * tk * isx + tn * tk * isw + tm * tn * iso)
        acc = tm * tn * 4 if use_acc else 0
        return buffered + acc

    # MXU-shaped base (256-multiples feed the 256-wide v6e/v7x MXU), clamped to the problem.
    tm = min(512, max_tm)
    tn = min(1024, max_tn)
    tk = min(1024, max_tk)

    # Shrink (K first, then N, then M) if the base does not fit the budget.
    while footprint(tm, tn, tk) > budget:
        if tk > 512:
            tk //= 2
        elif tn > 256:
            tn //= 2
        elif tm > max(sub_m, 128):
            tm = max(sub_m, tm // 2)
        else:
            break

    # Grow while budget remains: tk first (halves accumulator RMW traffic and
    # per-grid-step count), then tn (fewer X re-reads; key for small-M decode
    # shapes), then tm (fewer weight re-reads; key when the weight dominates).
    grew = True
    while grew:
        grew = False
        if tk < min(2048, max_tk) and footprint(tm, tn, min(tk * 2, max_tk)) <= budget:
            tk = min(tk * 2, max_tk)
            grew = True
        if tn < min(2048, max_tn) and footprint(tm, min(tn * 2, max_tn), tk) <= budget:
            tn = min(tn * 2, max_tn)
            grew = True
        if tm < min(1024, max_tm) and footprint(min(tm * 2, max_tm), tn, tk) <= budget:
            tm = min(tm * 2, max_tm)
            grew = True

    tm = _round_up(tm, sub_m)
    tn = _round_up(tn, 128)
    tk = _round_up(tk, 128)
    return tm, tn, tk


def _make_kernel(has_bias, use_acc_scratch, k_rem, compute_dtype):
    """Grid-step kernel for Y = X @ W^T (+ b).

    Refs per grid step (i: M tile, j: N tile, k: K tile):
      x_ref  : (tm, tk)  activation tile
      w_ref  : (tn, tk)  weight tile in native (output, input) layout
      b_ref  : (1,  tn)  bias tile (only if has_bias)
      o_ref  : (tm, tn)  output tile, resident across the K grid axis
      acc_ref: (tm, tn)  f32 scratch (only if the output dtype is not f32)

    k_rem = K % tk.  When nonzero, the last K tile is ragged: its out-of-bounds
    columns hold unspecified VMEM contents, so both operands are zero-masked
    there before feeding the MXU (valid outputs stay exact, no NaN leakage).
    """

    def kernel(*refs):
        if has_bias:
            x_ref, w_ref, b_ref, o_ref = refs[:4]
            rest = refs[4:]
        else:
            x_ref, w_ref, o_ref = refs[:3]
            b_ref = None
            rest = refs[3:]
        acc_ref = rest[0] if use_acc_scratch else o_ref

        k = pl.program_id(2)
        nk = pl.num_programs(2)

        @pl.when(k == 0)
        def _init():
            acc_ref[...] = jnp.zeros_like(acc_ref)

        def accumulate(x, w):
            if compute_dtype is not None:
                x = x.astype(compute_dtype)
                w = w.astype(compute_dtype)
            # Contract the last axis of both operands: X(tm,tk) @ W(tn,tk)^T on the MXU.
            acc_ref[...] += lax.dot_general(
                x, w,
                dimension_numbers=(((1,), (1,)), ((), ())),
                preferred_element_type=jnp.float32,
            )

        if k_rem == 0:
            accumulate(x_ref[...], w_ref[...])
        else:
            @pl.when(k < nk - 1)
            def _full_tile():
                accumulate(x_ref[...], w_ref[...])

            @pl.when(k == nk - 1)
            def _ragged_tile():
                x = x_ref[...]
                w = w_ref[...]
                xm = lax.broadcasted_iota(jnp.int32, x.shape, 1) < k_rem
                wm = lax.broadcasted_iota(jnp.int32, w.shape, 1) < k_rem
                accumulate(jnp.where(xm, x, jnp.zeros_like(x)),
                           jnp.where(wm, w, jnp.zeros_like(w)))

        if has_bias or use_acc_scratch:
            @pl.when(k == nk - 1)
            def _epilogue():
                res = acc_ref[...]
                if has_bias:
                    res = res + b_ref[...].astype(jnp.float32)
                o_ref[...] = res.astype(o_ref.dtype)

    return kernel


@functools.partial(
    jax.jit, static_argnames=("tm", "tn", "tk", "compute_dtype", "core_parallel_m"))
def column_parallel_linear(x, weight, bias=None, *, tm=None, tn=None, tk=None,
                           compute_dtype=None, core_parallel_m=False):
    """Y = x @ weight.T (+ bias).

    x      : [..., input_size]          (any leading shape; flattened to M rows)
    weight : [output_size, input_size]  (native Megatron layout; never transposed)
    bias   : [output_size] or None
    tm/tn/tk       : optional tile overrides; otherwise auto-picked per chip generation.
    compute_dtype  : optional MXU operand dtype (e.g. jnp.bfloat16); operands are cast
                     tile-wise inside the kernel, accumulation stays f32.
    core_parallel_m: mark the M grid axis pltpu.CORE_PARALLEL (2-TensorCore v7x parts).

    Output dtype follows x.dtype (mixed x/weight dtypes are accepted; the MXU
    accumulates in f32 and the result is cast back to x.dtype).
    """
    *lead, K = x.shape
    N, K_w = weight.shape
    assert K == K_w, f"feature mismatch: x has {K}, weight has {K_w}"
    M = 1
    for d in lead:
        M *= d

    out_dtype = x.dtype
    has_bias = bias is not None
    use_acc_scratch = np.dtype(out_dtype) != np.dtype(jnp.float32)
    sub_m = _sublane_multiple(x.dtype)

    capacity = _vmem_capacity_bytes()
    auto_tm, auto_tn, auto_tk = _pick_tiles(
        M, N, K, x.dtype, weight.dtype, out_dtype, sub_m, capacity)
    tm = auto_tm if tm is None else tm
    tn = auto_tn if tn is None else tn
    tk = auto_tk if tk is None else tk

    # Clamp explicit overrides to the problem; keep (sublane, 128) alignment.
    tm = _round_up(min(tm, _round_up(M, sub_m)), sub_m)
    tn = _round_up(min(tn, _round_up(N, 128)), 128)
    tk = _round_up(min(tk, _round_up(K, 128)), 128)

    gm, gn, gk = pl.cdiv(M, tm), pl.cdiv(N, tn), pl.cdiv(K, tk)
    k_rem = K % tk  # ragged last K tile handled inside the kernel (no jnp.pad)

    x2d = x.reshape(M, K)

    inputs = [x2d, weight]
    in_specs = [
        pl.BlockSpec((tm, tk), lambda i, j, k: (i, k)),   # X
        pl.BlockSpec((tn, tk), lambda i, j, k: (j, k)),   # W, native (N, K) layout
        # TODO(synk): for tiny-tm decode shapes an exposed weight DMA could be hidden
        # with pipeline_mode=pl.Buffered(3) on the W spec (costs +tn*tk VMEM).
    ]
    if has_bias:
        inputs.append(bias.reshape(1, N))
        in_specs.append(pl.BlockSpec((1, tn), lambda i, j, k: (0, j)))

    scratch_shapes = [pltpu.VMEM((tm, tn), jnp.float32)] if use_acc_scratch else []

    # Explicit scoped-VMEM limit sized to the chip: the 16 MiB (v5e) / 32 MiB
    # (v6e/v7x) defaults would otherwise cap the tile sizes picked above.
    vmem_limit = (capacity * 3) // 4

    # Advisory cost estimate for XLA's scheduler (re-read factors follow the grid).
    isz = lambda a: np.dtype(a.dtype).itemsize
    bytes_accessed = (
        M * K * isz(x2d) * gn            # X re-read once per N tile
        + N * K * isz(weight) * gm       # W re-read once per M tile
        + M * N * np.dtype(out_dtype).itemsize
        + (N * isz(bias) * gm if has_bias else 0)
    )
    cost = pl.CostEstimate(flops=2 * M * N * K, transcendentals=0,
                           bytes_accessed=bytes_accessed)

    dim_sem = (
        pltpu.CORE_PARALLEL if core_parallel_m else "parallel",
        "parallel",
        "arbitrary",
    )

    out2d = pl.pallas_call(
        _make_kernel(has_bias, use_acc_scratch, k_rem, compute_dtype),
        out_shape=jax.ShapeDtypeStruct((M, N), out_dtype),
        grid_spec=pltpu.PrefetchScalarGridSpec(
            num_scalar_prefetch=0,
            grid=(gm, gn, gk),
            in_specs=in_specs,
            out_specs=pl.BlockSpec((tm, tn), lambda i, j, k: (i, j)),
            scratch_shapes=scratch_shapes,
        ),
        compiler_params=pltpu.CompilerParams(
            dimension_semantics=dim_sem,
            vmem_limit_bytes=vmem_limit,
        ),
        cost_estimate=cost,
    )(*inputs)

    return out2d.reshape(*lead, N)


def make_params(key, input_size, output_size, dtype=jnp.float32):
    """xavier_normal_ weight init for weight of shape (output_size, input_size);
    bias is zero-initialized (matches the PyTorch module)."""
    std = (2.0 / (input_size + output_size)) ** 0.5
    weight = std * jax.random.normal(key, (output_size, input_size), dtype=jnp.float32)
    weight = weight.astype(dtype)
    bias = jnp.zeros((output_size,), dtype=dtype)
    return weight, bias


def column_parallel_linear_forward(x, weight, bias, skip_bias_add=False, **kwargs):
    """Mirrors ColumnParallelLinear.forward: returns (output, output_bias).

    world_size == 1 → copy_to_/gather_from_tensor_model_parallel_region are identities.
    """
    # TODO(synk): tensor-model-parallel copy/gather are identities at world_size=1;
    # multi-chip column sharding would use pltpu.make_async_remote_copy and is not modeled here.
    if skip_bias_add:
        out = column_parallel_linear(x, weight, None, **kwargs)  # no zero-bias DMA/add
        return out, bias
    out = column_parallel_linear(x, weight, bias, **kwargs)
    return out, None


if __name__ == "__main__":
    # Small shapes consistent with the module: seq=8, batch=2, hidden=128 -> 256.
    seq, batch = 8, 2
    input_size, output_size = 128, 256

    key = jax.random.PRNGKey(0)
    kx, kw = jax.random.split(key)
    x = jax.random.normal(kx, (seq, batch, input_size), dtype=jnp.float32)
    weight, bias = make_params(kw, input_size, output_size, dtype=jnp.float32)

    # Default path (bias fused in the kernel epilogue).
    out, out_bias = column_parallel_linear_forward(x, weight, bias)
    out = jax.block_until_ready(out)
    ref = jnp.einsum("sbk,nk->sbn", x, weight, precision="highest") + bias
    assert out.shape == (seq, batch, output_size)
    assert out_bias is None
    assert jnp.allclose(out, ref, atol=1e-3, rtol=1e-3)

    # skip_bias_add path (bias-free kernel variant, bias returned separately).
    out_nb, ret_bias = column_parallel_linear_forward(x, weight, bias, skip_bias_add=True)
    out_nb = jax.block_until_ready(out_nb)
    ref_nb = jnp.einsum("sbk,nk->sbn", x, weight, precision="highest")
    assert jnp.allclose(out_nb, ref_nb, atol=1e-3, rtol=1e-3)
    assert ret_bias is bias

    # Ragged shapes with NO wrapper-side padding: exercises the in-kernel K-edge
    # mask and Pallas's masked writeback of the ragged M/N output edges.
    seq2, batch2, in2, out2_sz = 5, 3, 200, 300
    k2x, k2w = jax.random.split(jax.random.PRNGKey(1))
    x2 = jax.random.normal(k2x, (seq2, batch2, in2), dtype=jnp.float32)
    w2, b2 = make_params(k2w, in2, out2_sz, dtype=jnp.float32)
    ref2 = jnp.einsum("sbk,nk->sbn", x2, w2, precision="highest") + b2

    y2, _ = column_parallel_linear_forward(x2, w2, b2)          # auto tiles, grid (1,1,1)
    y2 = jax.block_until_ready(y2)
    assert jnp.allclose(y2, ref2, atol=1e-3, rtol=1e-3)

    y3 = column_parallel_linear(x2, w2, b2, tm=8, tn=128, tk=128)  # ragged multi-step grid
    y3 = jax.block_until_ready(y3)
    assert jnp.allclose(y3, ref2, atol=1e-3, rtol=1e-3)

    # bf16 end-to-end (halved HBM traffic, 16-sublane M alignment, f32 acc scratch).
    xb, wb, bb = x.astype(jnp.bfloat16), weight.astype(jnp.bfloat16), bias.astype(jnp.bfloat16)
    yb, _ = column_parallel_linear_forward(xb, wb, bb)
    yb = jax.block_until_ready(yb)
    refb = jnp.einsum("sbk,nk->sbn", xb.astype(jnp.float32), wb.astype(jnp.float32),
                      precision="highest") + bb.astype(jnp.float32)
    assert jnp.allclose(yb.astype(jnp.float32), refb, atol=5e-2, rtol=5e-2)

    # f32 inputs with bf16 MXU operands (compute_dtype knob), f32 accumulation.
    yc = column_parallel_linear(x, weight, bias, compute_dtype=jnp.bfloat16)
    yc = jax.block_until_ready(yc)
    assert jnp.allclose(yc, ref, atol=5e-2, rtol=5e-2)

    print("KERNEL_OK")
</pallas_src>

<mosaic_0001>
module attributes {stable_mosaic.version = 11 : i64} {
  func.func @kernel(%arg0: i32, %arg1: i32, %arg2: i32, %arg3: memref<16x128xf32, #tpu.memory_space<vmem>>, %arg4: memref<256x128xf32, #tpu.memory_space<vmem>>, %arg5: memref<1x256xf32, #tpu.memory_space<vmem>>, %arg6: memref<16x256xf32, #tpu.memory_space<vmem>>) attributes {dimension_semantics = [#tpu.dimension_semantics<parallel>, #tpu.dimension_semantics<parallel>, #tpu.dimension_semantics<arbitrary>], iteration_bounds = array<i64: 1, 1, 1>, scalar_prefetch = 0 : i64, scratch_operands = 0 : i64, tpu.core_type = #tpu.core_type<tc>, window_params = [{transform_indices = @transform_0, window_bounds = array<i64: 16, 128>}, {transform_indices = @transform_1, window_bounds = array<i64: 256, 128>}, {transform_indices = @transform_2, window_bounds = array<i64: 1, 256>}, {transform_indices = @transform_3, window_bounds = array<i64: 16, 256>}]} {
    %c0_i32 = arith.constant 0 : i32
    %0 = arith.cmpi eq, %arg2, %c0_i32 : i32
    %1 = arith.extui %0 : i1 to i32
    %c0_i32_0 = arith.constant 0 : i32
    %2 = arith.cmpi ne, %1, %c0_i32_0 : i32
    scf.if %2 {
      %cst_10 = arith.constant 0.000000e+00 : f32
      %12 = vector.broadcast %cst_10 : f32 to vector<16x256xf32>
      %c0_11 = arith.constant 0 : index
      %c0_12 = arith.constant 0 : index
      %13 = vector.load %arg6[%c0_11, %c0_12] : memref<16x256xf32, #tpu.memory_space<vmem>>, vector<16x256xf32>
      tpu.vector_store %arg6[%c0_11, %c0_12], %12 {strides = array<i32>} : memref<16x256xf32, #tpu.memory_space<vmem>>, vector<16x256xf32>,
    } else {
    }
    %c0 = arith.constant 0 : index
    %c0_1 = arith.constant 0 : index
    %3 = vector.load %arg3[%c0, %c0_1] : memref<16x128xf32, #tpu.memory_space<vmem>>, vector<16x128xf32>
    %c0_2 = arith.constant 0 : index
    %c0_3 = arith.constant 0 : index
    %4 = vector.load %arg4[%c0_2, %c0_3] : memref<256x128xf32, #tpu.memory_space<vmem>>, vector<256x128xf32>
    %c0_4 = arith.constant 0 : index
    %c0_5 = arith.constant 0 : index
    %5 = vector.load %arg6[%c0_4, %c0_5] : memref<16x256xf32, #tpu.memory_space<vmem>>, vector<16x256xf32>
    %cst = arith.constant dense<0.000000e+00> : vector<16x256xf32>
    %6 = tpu.matmul %3, %4, %cst {dimension_numbers = #tpu.dot_dimension_numbers<[1], [1], [0], [0], [0, 0, 1, 0], [], []>} : vector<16x128xf32>, vector<256x128xf32>, vector<16x256xf32> -> vector<16x256xf32>
    %7 = arith.addf %5, %6 : vector<16x256xf32>
    %c0_6 = arith.constant 0 : index
    %c0_7 = arith.constant 0 : index
    %8 = vector.load %arg6[%c0_6, %c0_7] : memref<16x256xf32, #tpu.memory_space<vmem>>, vector<16x256xf32>
    tpu.vector_store %arg6[%c0_6, %c0_7], %7 {strides = array<i32>} : memref<16x256xf32, #tpu.memory_space<vmem>>, vector<16x256xf32>,
    %c0_i32_8 = arith.constant 0 : i32
    %9 = arith.cmpi eq, %arg2, %c0_i32_8 : i32
    %10 = arith.extui %9 : i1 to i32
    %c0_i32_9 = arith.constant 0 : i32
    %11 = arith.cmpi ne, %10, %c0_i32_9 : i32
    scf.if %11 {
      %c0_10 = arith.constant 0 : index
      %c0_11 = arith.constant 0 : index
      %12 = vector.load %arg6[%c0_10, %c0_11] : memref<16x256xf32, #tpu.memory_space<vmem>>, vector<16x256xf32>
      %c0_12 = arith.constant 0 : index
      %c0_13 = arith.constant 0 : index
      %13 = vector.load %arg5[%c0_12, %c0_13] : memref<1x256xf32, #tpu.memory_space<vmem>>, vector<1x256xf32>
      %14 = vector.broadcast %13 : vector<1x256xf32> to vector<16x256xf32>
      %15 = arith.addf %12, %14 : vector<16x256xf32>
      %c0_14 = arith.constant 0 : index
      %c0_15 = arith.constant 0 : index
      %16 = vector.load %arg6[%c0_14, %c0_15] : memref<16x256xf32, #tpu.memory_space<vmem>>, vector<16x256xf32>
      tpu.vector_store %arg6[%c0_14, %c0_15], %15 {strides = array<i32>} : memref<16x256xf32, #tpu.memory_space<vmem>>, vector<16x256xf32>,
    } else {
    }
    return
  }
  func.func @transform_0(%arg0: i32, %arg1: i32, %arg2: i32) -> (i32, i32) {
    %c0_i32 = arith.constant 0 : i32
    return %arg0, %arg2 : i32, i32
  }
  func.func @transform_1(%arg0: i32, %arg1: i32, %arg2: i32) -> (i32, i32) {
    %c0_i32 = arith.constant 0 : i32
    return %arg1, %arg2 : i32, i32
  }
  func.func @transform_2(%arg0: i32, %arg1: i32, %arg2: i32) -> (i32, i32) {
    %c0_i32 = arith.constant 0 : i32
    %c0_i32_0 = arith.constant 0 : i32
    return %c0_i32, %arg1 : i32, i32
  }
  func.func @transform_3(%arg0: i32, %arg1: i32, %arg2: i32) -> (i32, i32) {
    %c0_i32 = arith.constant 0 : i32
    return %arg0, %arg1 : i32, i32
  }
}

</mosaic_0001>

<bundles_post_ra>
// kernel: column_parallel_linear.1
= control target key start
LH: loop header
LB: loop body
LE: loop exit
PB: predicated region body
PF: predicated region fallthrough
CT: control target
= control target key end

     0   :  { %8 = vsyncpa [#allocation3], 0  ;;  %s376_s0 = inlined_call_operand.hbm [shape: f32[16,128], index: 0, kind: input, shape index: {}]   ;;  %s377_s1 = inlined_call_operand.hbm [shape: f32[256,128], index: 1, kind: input, shape index: {}]   ;;  %s378_s2 = inlined_call_operand.vmem [shape: f32[1,256], index: 2, kind: input, shape index: {}]   ;;  %s379_s3 = inlined_call_operand.vmem [shape: f32[16,256], index: 3, kind: output, shape index: {}]  }
   0x1   :  { %9 = vsyncpa [#allocation5], 0  ;;  %s323_s12 = smov [#allocation2]  }
   0x2   :  { %s15_s13 = sshll.u32 %s323_s12, 4  ;;  %s16_s13 = int_to_ptr.vmem [resolvable:$true] %s15_s13 }
   0x3   :  { %s287_s14 = scalar_lea.vmem %s16_s13, 256  ;;  %p292_p1 = scmp.lt.s32.totalorder %s16_s13, %s16_s13 }
   0x4   :  { %p288_p0 = scmp.ne.s32.totalorder %s16_s13, %s287_s14  ;;  %p293_p2 = scmp.lt.s32.totalorder %s287_s14, %s287_s14 }
   0x6   :  { %p294_p3 = por %p293_p2, %p292_p1 }
   0x8   :  { %p295_p4 = pnand %p294_p3, %p288_p0 }
   0xa   :  { %298 = shalt.err (!%p295_p4)
}
   0xb   :  { %s324_s15 = smov 128   ;;  %s325_s16 = smov 8  }
   0xc   :  { %21 = dma.hbm_to_vmem [thread:$0]  %s376_s0, 256, %s16_s13, [#allocation3], %s324_s15, %s324_s15, %s325_s16  }
   0xd   :  { %s326_s19 = smov [#allocation4]  }
   0xe   :  { %s27_s20 = sshll.u32 %s326_s19, 4  ;;  %s28_s20 = int_to_ptr.vmem [resolvable:$true] %s27_s20 }
   0xf   :  { %s307_s21 = scalar_lea.vmem %s28_s20, 4096  ;;  %p312_p6 = scmp.lt.s32.totalorder %s28_s20, %s28_s20 }
  0x10   :  { %p308_p5 = scmp.ne.s32.totalorder %s28_s20, %s307_s21  ;;  %p313_p7 = scmp.lt.s32.totalorder %s307_s21, %s307_s21 }
  0x12   :  { %p314_p8 = por %p313_p7, %p312_p6 }
  0x14   :  { %p315_p9 = pnand %p314_p8, %p308_p5 }
  0x16   :  { %318 = shalt.err (!%p315_p9)
}
  0x17   :  { %33 = dma.hbm_to_vmem [thread:$0]  %s377_s1, 4096, %s28_s20, [#allocation5], %s324_s15, %s324_s15, %s325_s16  }
  0x18   :  { %319 = dma.done.wait [#allocation3], 256  }
  0x19   :  { %320 = vsyncadd [#allocation3], 4294967040 }
  0x1a   :  { %321 = dma.done.wait [#allocation5], 4096  }
  0x1b   :  { %322 = vsyncadd [#allocation5], 4294963200  ;;  %v83_v0 = vld [vmem:[#allocation4 + $0xf8] sm:$0xff]  ;;  %v82_v2 = vld [vmem:[#allocation4 + $0xf0] sm:$0xff]  ;;  %v182_v34 = vlaneseq }
  0x1c   :  { %v67_v1 = vld [vmem:[#allocation4 + $0x78] sm:$0xff]  ;;  %206 = vmatprep.subr.mxu0 %v83_v0  ;;  %242 = vmatprep.subr.mxu1 %v83_v0  ;;  %v66_v3 = vld [vmem:[#allocation4 + $0x70] sm:$0xff]  ;;  %v81_v4 = vld [vmem:[#allocation4 + $0xe8] sm:$0xff] }
  0x1d   :  { %207 = vmatpush3.xpose.msra.mxu0 %v67_v1  ;;  %258 = vmatpush3.xpose.msra.mxu1 %v67_v1  ;;  %v65_v5 = vld [vmem:[#allocation4 + $0x68] sm:$0xff]  ;;  %v80_v6 = vld [vmem:[#allocation4 + $0xe0] sm:$0xff]  ;;  %v353_v7 = vld [vmem:[#allocation2] sm:$0xff]  ;;  %v183_v35 = vshrl.u32 %v182_v34, 7 }
  0x1e   :  { %208 = vmatprep.subr.mxu0 %v82_v2  ;;  %243 = vmatprep.subr.mxu1 %v82_v2  ;;  %v64_v8 = vld [vmem:[#allocation4 + $0x60] sm:$0xff]  ;;  %v355_v9 = vld [vmem:[#allocation2 + $0x8] sm:$0xff]  ;;  %v78_v12 = vld [vmem:[#allocation4 + $0xd0] sm:$0xff] }
  0x1f   :  { %v79_v10 = vld [vmem:[#allocation4 + $0xd8] sm:$0xff]  ;;  %238 = vmatprep.mubr.f32.mxu0 %v353_v7  ;;  %240 = vmatprep.mubr.f32.mxu1 %v355_v9  ;;  %v62_v13 = vld [vmem:[#allocation4 + $0x50] sm:$0xff]  ;;  %v77_v14 = vld [vmem:[#allocation4 + $0xc8] sm:$0xff]  ;;  %v184_v36 = vsub.s32 0, %v183_v35  ;;  %v188_v38 = vsub.s32 1, %v183_v35 }
  0x20   :  { %v63_v11 = vld [vmem:[#allocation4 + $0x58] sm:$0xff]  ;;  %v61_v15 = vld [vmem:[#allocation4 + $0x48] sm:$0xff]  ;;  %v76_v16 = vld [vmem:[#allocation4 + $0xc0] sm:$0xff] }
  0x21   :  { %209 = vmatpush3.xpose.msra.mxu0 %v66_v3  ;;  %259 = vmatpush3.xpose.msra.mxu1 %v66_v3  ;;  %v60_v17 = vld [vmem:[#allocation4 + $0x40] sm:$0xff]  ;;  %v75_v18 = vld [vmem:[#allocation4 + $0xb8] sm:$0xff]  ;;  %v74_v20 = vld [vmem:[#allocation4 + $0xb0] sm:$0xff] }
  0x22   :  { %210 = vmatprep.subr.mxu0 %v81_v4  ;;  %244 = vmatprep.subr.mxu1 %v81_v4  ;;  %v59_v19 = vld [vmem:[#allocation4 + $0x38] sm:$0xff]  ;;  %v58_v21 = vld [vmem:[#allocation4 + $0x30] sm:$0xff]  ;;  %v73_v22 = vld [vmem:[#allocation4 + $0xa8] sm:$0xff] }
  0x23   :  { %v57_v23 = vld [vmem:[#allocation4 + $0x28] sm:$0xff]  ;;  %v72_v24 = vld [vmem:[#allocation4 + $0xa0] sm:$0xff]  ;;  %v71_v26 = vld [vmem:[#allocation4 + $0x98] sm:$0xff] }
  0x24   :  { %v56_v25 = vld [vmem:[#allocation4 + $0x20] sm:$0xff]  ;;  %v55_v27 = vld [vmem:[#allocation4 + $0x18] sm:$0xff]  ;;  %v70_v28 = vld [vmem:[#allocation4 + $0x90] sm:$0xff] }
  0x25   :  { %211 = vmatpush3.xpose.msra.mxu0 %v65_v5  ;;  %260 = vmatpush3.xpose.msra.mxu1 %v65_v5  ;;  %v54_v29 = vld [vmem:[#allocation4 + $0x10] sm:$0xff]  ;;  %v69_v30 = vld [vmem:[#allocation4 + $0x88] sm:$0xff]  ;;  %v68_v32 = vld [vmem:[#allocation4 + $0x80] sm:$0xff] }
  0x26   :  { %212 = vmatprep.subr.mxu0 %v80_v6  ;;  %245 = vmatprep.subr.mxu1 %v80_v6  ;;  %v53_v31 = vld [vmem:[#allocation4 + $0x8] sm:$0xff]  ;;  %v52_v33 = vld [vmem:[#allocation4] sm:$0xff]  ;;  %v180_v37 = vld [vmem:[%s378_s2] sm:$0x3] }
  0x27   :  { %v185_v39 = vrot.slane %v180_v37, %v184_v36  ;;  %v189_v42 = vrot.slane %v180_v37, %v188_v38 }
  0x29   :  { %213 = vmatpush3.xpose.msra.mxu0 %v64_v8  ;;  %261 = vmatpush3.xpose.msra.mxu1 %v64_v8 }
  0x2a   :  { %214 = vmatprep.subr.mxu0 %v79_v10  ;;  %246 = vmatprep.subr.mxu1 %v79_v10 }
  0x2d   :  { %215 = vmatpush3.xpose.msra.mxu0 %v63_v11  ;;  %262 = vmatpush3.xpose.msra.mxu1 %v63_v11 }
  0x2e   :  { %216 = vmatprep.subr.mxu0 %v78_v12  ;;  %247 = vmatprep.subr.mxu1 %v78_v12 }
  0x31   :  { %217 = vmatpush3.xpose.msra.mxu0 %v62_v13  ;;  %263 = vmatpush3.xpose.msra.mxu1 %v62_v13 }
  0x32   :  { %218 = vmatprep.subr.mxu0 %v77_v14  ;;  %248 = vmatprep.subr.mxu1 %v77_v14 }
  0x35   :  { %219 = vmatpush3.xpose.msra.mxu0 %v61_v15  ;;  %264 = vmatpush3.xpose.msra.mxu1 %v61_v15 }
  0x36   :  { %220 = vmatprep.subr.mxu0 %v76_v16  ;;  %249 = vmatprep.subr.mxu1 %v76_v16 }
  0x39   :  { %221 = vmatpush3.xpose.msra.mxu0 %v60_v17  ;;  %265 = vmatpush3.xpose.msra.mxu1 %v60_v17 }
  0x3a   :  { %222 = vmatprep.subr.mxu0 %v75_v18  ;;  %250 = vmatprep.subr.mxu1 %v75_v18 }
  0x3d   :  { %223 = vmatpush3.xpose.msra.mxu0 %v59_v19  ;;  %266 = vmatpush3.xpose.msra.mxu1 %v59_v19 }
  0x3e   :  { %224 = vmatprep.subr.mxu0 %v74_v20  ;;  %251 = vmatprep.subr.mxu1 %v74_v20 }
  0x41   :  { %225 = vmatpush3.xpose.msra.mxu0 %v58_v21  ;;  %267 = vmatpush3.xpose.msra.mxu1 %v58_v21 }
  0x42   :  { %226 = vmatprep.subr.mxu0 %v73_v22  ;;  %252 = vmatprep.subr.mxu1 %v73_v22 }
  0x45   :  { %227 = vmatpush3.xpose.msra.mxu0 %v57_v23  ;;  %268 = vmatpush3.xpose.msra.mxu1 %v57_v23 }
  0x46   :  { %228 = vmatprep.subr.mxu0 %v72_v24  ;;  %253 = vmatprep.subr.mxu1 %v72_v24 }
  0x49   :  { %229 = vmatpush3.xpose.msra.mxu0 %v56_v25  ;;  %269 = vmatpush3.xpose.msra.mxu1 %v56_v25 }
  0x4a   :  { %230 = vmatprep.subr.mxu0 %v71_v26  ;;  %254 = vmatprep.subr.mxu1 %v71_v26 }
  0x4d   :  { %231 = vmatpush3.xpose.msra.mxu0 %v55_v27  ;;  %270 = vmatpush3.xpose.msra.mxu1 %v55_v27 }
  0x4e   :  { %232 = vmatprep.subr.mxu0 %v70_v28  ;;  %255 = vmatprep.subr.mxu1 %v70_v28 }
  0x51   :  { %233 = vmatpush3.xpose.msra.mxu0 %v54_v29  ;;  %271 = vmatpush3.xpose.msra.mxu1 %v54_v29 }
  0x52   :  { %234 = vmatprep.subr.mxu0 %v69_v30  ;;  %256 = vmatprep.subr.mxu1 %v69_v30 }
  0x55   :  { %235 = vmatpush3.xpose.msra.mxu0 %v53_v31  ;;  %272 = vmatpush3.xpose.msra.mxu1 %v53_v31 }
  0x56   :  { %236 = vmatprep.subr.mxu0 %v68_v32  ;;  %257 = vmatprep.subr.mxu1 %v68_v32 }
  0x59   :  { %237 = vmatpush3.xpose.msra.mxu0 %v52_v33  ;;  %273 = vmatpush3.xpose.msra.mxu1 %v52_v33 }
  0x5c   :  { %239 = vmatmul.mubr.f32.vlgmr.msra.gmra.mxu0 %v353_v7  ;;  %241 = vmatmul.mubr.f32.vlgmr.msra.gmra.mxu1 %v355_v9 }
 0x11c   :  { %v154_v40 = vpop.f32.mrf.mxu0  ;;  %v160_v41 = vpop.f32.mrf.mxu1 }
 0x11d   :  { %v192_v45 = vadd.f32 %v185_v39, %v154_v40  ;;  %v194_v46 = vadd.f32 %v185_v39, %v160_v41 }
 0x11e   :  { %v156_v43 = vpop.f32.mrf.mxu0  ;;  %v162_v44 = vpop.f32.mrf.mxu1 }
 0x11f   :  { %196 = vst [vmem:[%s379_s3] sm:$0xff] %v192_v45  ;;  %198 = vst [vmem:[%s379_s3 + $0x10] sm:$0xff] %v194_v46  ;;  %v193_v47 = vadd.f32 %v189_v42, %v156_v43  ;;  %v195_v48 = vadd.f32 %v189_v42, %v162_v44 }
 0x121   :  { %197 = vst [vmem:[%s379_s3 + $0x8] sm:$0xff] %v193_v47  ;;  %199 = vst [vmem:[%s379_s3 + $0x18] sm:$0xff] %v195_v48 }
 0x122   :  { %204 = vsyncpa [#allocation3], 1 }
 0x123   :  { %205 = vsyncpa [#allocation5], 1 }

</bundles_post_ra>
